<compile_context>
chip_gen: v7x
topology: tpu7x:2x2x1
jax: 0.10.0
libtpu: 0.0.40
codegen_flags: <defaults>
</compile_context>

<pallas_src>
import functools

import jax
import jax.numpy as jnp
from jax.experimental import pallas as pl
from jax.experimental.pallas import tpu as pltpu

INPUT_SIZE = 28 * 28      # 784
HIDDEN_SIZE = 128
OUTPUT_SIZE = 10
OUTPUT_PAD = 128          # lane-dense output width (sliced back to OUTPUT_SIZE)
BN_EPS = 1e-5


def fc1_stats_kernel(x_ref, w1_ref, h_ref, pstats_ref, *, tb, batch):
    """Phase 1: h = x @ w1 (bf16 in, f32 acc); per-tile BN sum / sum-of-squares."""
    i = pl.program_id(0)
    h = jnp.dot(x_ref[...], w1_ref[...], preferred_element_type=jnp.float32)
    h_ref[...] = h
    # Last tile may overhang the real batch; overhang x reads are unspecified,
    # so mask those rows out of the statistics (select, so NaN garbage is dropped).
    row = i * tb + jax.lax.broadcasted_iota(jnp.int32, h.shape, 0)
    h_valid = jnp.where(row < batch, h, 0.0)
    s = jnp.sum(h_valid, axis=0, keepdims=True)
    ss = jnp.sum(h_valid * h_valid, axis=0, keepdims=True)
    pstats_ref[0] = jnp.concatenate([s, ss], axis=0)


def bn_relu_fc2_kernel(stats_ref, gamma_ref, beta_ref, h_ref, w2_ref, b2_ref,
                       o_ref, *, inv_b):
    """Phase 2: BN normalize (gamma folded into scale), ReLU, lane-dense fc2."""
    mean = stats_ref[0:1, :] * inv_b
    var = jnp.maximum(stats_ref[1:2, :] * inv_b - mean * mean, 0.0)  # biased batch var
    scale = gamma_ref[...] * jax.lax.rsqrt(var + BN_EPS)
    shift = beta_ref[...] - mean * scale
    h_act = jnp.maximum(h_ref[...] * scale + shift, 0.0)
    o_ref[...] = jnp.dot(h_act, w2_ref[...],
                         preferred_element_type=jnp.float32) + b2_ref[...]


def model_with_batchnorm(x, w1, b1, gamma, beta, w2, b2, *, tb=512):
    """x: (B, INPUT_SIZE) f32. Returns (B, OUTPUT_SIZE) f32 (training-mode BN)."""
    del b1  # fc1 bias cancels exactly under BN's batch-mean subtraction.
    B, K = x.shape
    H = w1.shape[1]
    O = w2.shape[1]

    assert tb % 16 == 0, "batch tile must be a multiple of 16 (bf16 sublane packing)"
    TB = B if B <= tb else tb        # full-array block when the batch is small
    NB = pl.cdiv(B, TB)

    # bf16 on the x / w1 stream halves HBM traffic and matches the native bf16 MXU;
    # accumulation stays f32 via preferred_element_type. BN math stays f32.
    x_bf = x.astype(jnp.bfloat16)
    w1_bf = w1.astype(jnp.bfloat16)

    # Lane-dense fc2: pad output width 10 -> 128 with zeros, slice back after the call.
    w2p = jnp.zeros((H, OUTPUT_PAD), jnp.float32).at[:, :O].set(w2)
    b2p = jnp.zeros((1, OUTPUT_PAD), jnp.float32).at[:, :O].set(b2.reshape(1, O))

    cparams = pltpu.CompilerParams(
        dimension_semantics=("parallel",),        # batch tiles are fully independent
        vmem_limit_bytes=32 * 1024 * 1024)        # explicit; fits v5e/v6e/v7x scoped VMEM

    # ---- phase 1: fc1 + per-tile BN partial stats, pipelined over batch tiles ----
    h, pstats = pl.pallas_call(
        functools.partial(fc1_stats_kernel, tb=TB, batch=B),
        grid=(NB,),
        in_specs=[pl.BlockSpec((TB, K), lambda i: (i, 0)),      # x: streamed
                  pl.BlockSpec((K, H), lambda i: (0, 0))],      # w1: resident
        out_specs=[pl.BlockSpec((TB, H), lambda i: (i, 0)),     # h stash -> HBM
                   pl.BlockSpec((1, 2, H), lambda i: (i, 0, 0))],
        out_shape=[jax.ShapeDtypeStruct((B, H), jnp.float32),
                   jax.ShapeDtypeStruct((NB, 2, H), jnp.float32)],
        compiler_params=cparams,
    )(x_bf, w1_bf)

    # Tiny cross-tile (and, on v7x, cross-core) reduction of BN partials.
    stats = jnp.sum(pstats, axis=0)                             # (2, H) f32

    # ---- phase 2: normalize + ReLU + fc2, pipelined over batch tiles ----
    out_pad = pl.pallas_call(
        functools.partial(bn_relu_fc2_kernel, inv_b=1.0 / B),
        grid=(NB,),
        in_specs=[pl.BlockSpec((2, H), lambda i: (0, 0)),       # BN stats (resident)
                  pl.BlockSpec((1, H), lambda i: (0, 0)),       # gamma
                  pl.BlockSpec((1, H), lambda i: (0, 0)),       # beta
                  pl.BlockSpec((TB, H), lambda i: (i, 0)),      # h: streamed
                  pl.BlockSpec((H, OUTPUT_PAD), lambda i: (0, 0)),   # w2 (padded)
                  pl.BlockSpec((1, OUTPUT_PAD), lambda i: (0, 0))],  # b2 (padded)
        out_specs=pl.BlockSpec((TB, OUTPUT_PAD), lambda i: (i, 0)),
        out_shape=jax.ShapeDtypeStruct((B, OUTPUT_PAD), jnp.float32),
        compiler_params=cparams,
    )(stats, gamma, beta, h, w2p, b2p)

    # TODO(synk): training-mode BatchNorm1d also updates running_mean/running_var EMA
    # buffers; only the forward output is produced here.
    return out_pad[:, :O]


def init_params(key):
    """Deterministic init matching nn.Linear / nn.BatchNorm1d parameter shapes.

    nn.Linear stores weight as (out, in); we pre-transpose to (in, out).
    Biases / BN params are kept as (1, dim) 2-D rows for TPU-friendly layout.
    """
    k1, k2, k3, k4 = jax.random.split(key, 4)
    bound1 = 1.0 / jnp.sqrt(INPUT_SIZE)
    bound2 = 1.0 / jnp.sqrt(HIDDEN_SIZE)
    w1 = jax.random.uniform(k1, (INPUT_SIZE, HIDDEN_SIZE), jnp.float32,
                            -bound1, bound1)
    b1 = jax.random.uniform(k2, (1, HIDDEN_SIZE), jnp.float32, -bound1, bound1)
    gamma = jnp.ones((1, HIDDEN_SIZE), jnp.float32)   # BatchNorm1d weight
    beta = jnp.zeros((1, HIDDEN_SIZE), jnp.float32)   # BatchNorm1d bias
    w2 = jax.random.uniform(k3, (HIDDEN_SIZE, OUTPUT_SIZE), jnp.float32,
                            -bound2, bound2)
    b2 = jax.random.uniform(k4, (1, OUTPUT_SIZE), jnp.float32, -bound2, bound2)
    return w1, b1, gamma, beta, w2, b2


def reference(x, w1, b1, gamma, beta, w2, b2):
    """Pure-JAX f32 reference with the exact PyTorch-module semantics (incl. b1)."""
    h = x @ w1 + b1
    mean = jnp.mean(h, axis=0, keepdims=True)
    var = jnp.mean((h - mean) ** 2, axis=0, keepdims=True)   # biased, training mode
    h = (h - mean) / jnp.sqrt(var + BN_EPS) * gamma + beta
    h = jnp.maximum(h, 0.0)
    return h @ w2 + b2


if __name__ == "__main__":
    key = jax.random.PRNGKey(0)
    k_x, k_p = jax.random.split(key)
    B = 200                                   # small, but exercises multi-tile grid
    x = jax.random.normal(k_x, (B, INPUT_SIZE), jnp.float32)
    params = init_params(k_p)

    # tb=64 -> 4 batch tiles with a ragged (masked) last tile.
    out = model_with_batchnorm(x, *params, tb=64)
    out = jax.block_until_ready(out)

    ref = reference(x, *params)
    assert out.shape == (B, OUTPUT_SIZE)
    max_err = float(jnp.max(jnp.abs(out - ref)))
    # bf16 fc1 inputs => tolerance relaxed vs. the pure-f32 reference.
    assert jnp.allclose(out, ref, atol=2e-2, rtol=2e-2), \
        f"mismatch vs JAX reference (max abs err {max_err})"

    print("KERNEL_OK")
</pallas_src>

<mosaic_0001>
module attributes {stable_mosaic.version = 11 : i64} {
  func.func @fc1_stats_kernel(%arg0: i32, %arg1: memref<64x784xbf16, #tpu.memory_space<vmem>>, %arg2: memref<784x128xbf16, #tpu.memory_space<vmem>>, %arg3: memref<64x128xf32, #tpu.memory_space<vmem>>, %arg4: memref<1x2x128xf32, #tpu.memory_space<vmem>>) attributes {dimension_semantics = [#tpu.dimension_semantics<parallel>], iteration_bounds = array<i64: 4>, scalar_prefetch = 0 : i64, scratch_operands = 0 : i64, tpu.core_type = #tpu.core_type<tc>, window_params = [{transform_indices = @transform_0, window_bounds = array<i64: 64, 784>}, {pipeline_mode = #tpu.pipeline_mode<synchronous>, transform_indices = @transform_1, window_bounds = array<i64: 784, 128>}, {transform_indices = @transform_2, window_bounds = array<i64: 64, 128>}, {transform_indices = @transform_3, window_bounds = array<i64: 1, 2, 128>}]} {
    %c0 = arith.constant 0 : index
    %c0_0 = arith.constant 0 : index
    %0 = vector.load %arg1[%c0, %c0_0] : memref<64x784xbf16, #tpu.memory_space<vmem>>, vector<64x784xbf16>
    %c0_1 = arith.constant 0 : index
    %c0_2 = arith.constant 0 : index
    %1 = vector.load %arg2[%c0_1, %c0_2] : memref<784x128xbf16, #tpu.memory_space<vmem>>, vector<784x128xbf16>
    %cst = arith.constant dense<0.000000e+00> : vector<64x128xf32>
    %2 = tpu.matmul %0, %1, %cst {dimension_numbers = #tpu.dot_dimension_numbers<[1], [0], [0], [1], [0, 0, 1, 1], [], []>} : vector<64x784xbf16>, vector<784x128xbf16>, vector<64x128xf32> -> vector<64x128xf32>
    %c0_3 = arith.constant 0 : index
    %c0_4 = arith.constant 0 : index
    %3 = vector.load %arg3[%c0_3, %c0_4] : memref<64x128xf32, #tpu.memory_space<vmem>>, vector<64x128xf32>
    tpu.vector_store %arg3[%c0_3, %c0_4], %2 {strides = array<i32>} : memref<64x128xf32, #tpu.memory_space<vmem>>, vector<64x128xf32>,
    %c64_i32 = arith.constant 64 : i32
    %4 = arith.muli %arg0, %c64_i32 : i32
    %5 = tpu.iota {dimensions = array<i32: 0>} : vector<64x128xi32>
    %6 = vector.broadcast %4 : i32 to vector<64x128xi32>
    %7 = arith.addi %6, %5 : vector<64x128xi32>
    %c200_i32 = arith.constant 200 : i32
    %8 = vector.broadcast %c200_i32 : i32 to vector<64x128xi32>
    %9 = arith.cmpi slt, %7, %8 : vector<64x128xi32>
    %cst_5 = arith.constant 0.000000e+00 : f32
    %10 = vector.broadcast %cst_5 : f32 to vector<64x128xf32>
    %11 = arith.select %9, %2, %10 : vector<64x128xi1>, vector<64x128xf32>
    %cst_6 = arith.constant dense<0.000000e+00> : vector<128xf32>
    %12 = vector.multi_reduction <add>, %11, %cst_6 [0] : vector<64x128xf32> to vector<128xf32>
    %13 = vector.shape_cast %12 : vector<128xf32> to vector<1x128xf32>
    %14 = arith.mulf %11, %11 : vector<64x128xf32>
    %cst_7 = arith.constant dense<0.000000e+00> : vector<128xf32>
    %15 = vector.multi_reduction <add>, %14, %cst_7 [0] : vector<64x128xf32> to vector<128xf32>
    %16 = vector.shape_cast %15 : vector<128xf32> to vector<1x128xf32>
    %17 = tpu.concatenate %13, %16 in 0 : vector<1x128xf32>, vector<1x128xf32> -> vector<2x128xf32>
    %c0_8 = arith.constant 0 : index
    %c0_9 = arith.constant 0 : index
    %c0_10 = arith.constant 0 : index
    %18 = vector.load %arg4[%c0_8, %c0_9, %c0_10] : memref<1x2x128xf32, #tpu.memory_space<vmem>>, vector<1x2x128xf32>
    %19 = vector.shape_cast %18 : vector<1x2x128xf32> to vector<2x128xf32>
    %20 = vector.shape_cast %17 : vector<2x128xf32> to vector<1x2x128xf32>
    tpu.vector_store %arg4[%c0_8, %c0_9, %c0_10], %20 {strides = array<i32>} : memref<1x2x128xf32, #tpu.memory_space<vmem>>, vector<1x2x128xf32>,
    return
  }
  func.func @transform_0(%arg0: i32) -> (i32, i32) {
    %c0_i32 = arith.constant 0 : i32
    %c0_i32_0 = arith.constant 0 : i32
    return %arg0, %c0_i32 : i32, i32
  }
  func.func @transform_1(%arg0: i32) -> (i32, i32) {
    %c0_i32 = arith.constant 0 : i32
    %c0_i32_0 = arith.constant 0 : i32
    %c0_i32_1 = arith.constant 0 : i32
    return %c0_i32, %c0_i32_0 : i32, i32
  }
  func.func @transform_2(%arg0: i32) -> (i32, i32) {
    %c0_i32 = arith.constant 0 : i32
    %c0_i32_0 = arith.constant 0 : i32
    return %arg0, %c0_i32 : i32, i32
  }
  func.func @transform_3(%arg0: i32) -> (i32, i32, i32) {
    %c0_i32 = arith.constant 0 : i32
    %c0_i32_0 = arith.constant 0 : i32
    %c0_i32_1 = arith.constant 0 : i32
    return %arg0, %c0_i32, %c0_i32_0 : i32, i32, i32
  }
}

</mosaic_0001>

<bundles_post_ra>
// kernel: tpu_custom_call.1
= control target key start
LH: loop header
LB: loop body
LE: loop exit
PB: predicated region body
PF: predicated region fallthrough
CT: control target
= control target key end

     0   :  { %9 = vsyncpa [#allocation3], 0  ;;  %s2224_s0 = inlined_call_operand.hbm [shape: bf16[200,784], index: 0, kind: input, shape index: {}]   ;;  %s2225_s1 = inlined_call_operand.hbm [shape: bf16[784,128], index: 1, kind: input, shape index: {}]   ;;  %s2226_s2 = inlined_call_operand.hbm [shape: f32[200,128], index: 2, kind: output, shape index: {0}]   ;;  %s2227_s3 = inlined_call_operand.hbm [shape: f32[4,2,128], index: 3, kind: output, shape index: {1}]  }
   0x1   :  { %11 = vsyncpa [#allocation3 + $0x1], 0 }
   0x2   :  { %12 = vsyncpa [#allocation6], 0 }
   0x3   :  { %13 = vsyncpa [#allocation4], 0 }
   0x4   :  { %15 = vsyncpa [#allocation4 + $0x1], 0 }
   0x5   :  { %16 = vsyncpa [#allocation9], 0 }
   0x6   :  { %18 = vsyncpa [#allocation9 + $0x1], 0  ;;  %s1908_s12 = smov 0   ;;  %s1910_s13 = smov 0  }
   0x7   :  { %s1912_s14 = smov 0   ;;  %s1914_s15 = smov 0  }
   0x8 LB: > { %s1929_s16 = sadd.s32 4294967295, %s1876_s15   ;;  %s1305_s17 = sadd.s32 4294967294, %s1876_s15   ;;  %s1876_s15 = sphi %s1914_s15, %s2249_s15   ;;  %s1872_s14 = sphi %s1912_s14, %s2248_s14   ;;  %s1868_s13 = sphi %s1910_s13, %s2247_s13   ;;  %s1864_s12 = sphi %s1908_s12, %s2246_s12  }
   0x9   : > { %s1933_s18 = sadd.s32 1, %s1876_s15   ;;  %s31_s19 = sadd.s32 1, %s1872_s14 }
   0xa   : > { %s28_s20 = ssub.s32 %s1876_s15, %s1933_s18  ;;  %p38_p0 = scmp.ne.s32.totalorder %s1872_s14, %s1868_s13 }
   0xb   : > { %p29_p1 = scmp.eq.s32.totalorder %s28_s20, 0  ;;  %p39_p2 = scmp.eq.s32.totalorder %s1876_s15, 0 }
   0xc   : > { %p44_p3 = scmp.ne.s32.totalorder %s1868_s13, %s1864_s12  ;;  %p2228_p4 = scmp.eq.s32.totalorder %s1929_s16, 0 }
   0xd   : > { %s1945_s21 = scalar_select %p29_p1, %s1872_s14, %s31_s19  }
   0xe   : > { %p1947_p5 = por %p39_p2, %p38_p0  ;;  %p1953_p6 = por %p2228_p4, %p44_p3 }
   0xf   : > { %p89_p7 = scmp.eq.s32.totalorder %s1929_s16, 3  ;;  %p95_p8 = scmp.eq.s32.totalorder %s1305_s17, 3 }
  0x10   : > { %s2232_s22 = scalar_select %p1947_p5, 1, 0 }
  0x11   : > { %s2233_s23 = scalar_select %p1953_p6, 1, 0 }
  0x12   : > { %p1306_p9 = scmp.ge.s32.totalorder %s1876_s15, 1  ;;  %p128_p10 = scmp.lt.s32.totalorder %s1876_s15, 5 }
  0x13   : > { %p1960_p11 = por %p89_p7, %p38_p0  ;;  %p1964_p12 = por %p95_p8, %p44_p3 }
  0x14   : > { %p1968_p13 = pnand %p1306_p9, %p128_p10  ;;  %s1878_s27 = smov [#allocation5]  }
  0x15   : > { %s2234_s24 = scalar_select %p1960_p11, 1, 0 }
  0x16   : > { %s2235_s25 = scalar_select %p1964_p12, 1, 0 }
  0x17   : > { %s2236_s26 = scalar_select %p1968_p13, 1, 0 }
  0x18   : > { %p1576_p1 = pneg %p1968_p13  ;;  %s140_s28 = sshll.u32 %s1878_s27, 4  ;;  %s141_s28 = int_to_ptr.vmem [resolvable:$true] %s140_s28 }
  0x19   : > { %s1718_s5 = scalar_lea.hbm %s2225_s1, 6272 }
  0x1a   : > { %p1976_p2 = pnand %p1576_p1, %p2228_p4  ;;  %p1719_p0 = scmp.ne.s32.totalorder %s2225_s1, %s1718_s5 }
  0x1b   : > { %p1725_p9 = scmp.lt.u32.totalorder %s1718_s5, %s2225_s1 }
  0x1c   : > { %p1720_p3 = pneg %p1976_p2 }
  0x1e   : > { %p1721_p7 = pnand %p1720_p3, %p1719_p0 }
  0x20   : > { %p1722_p8 = pneg %p1721_p7 }
  0x22   : > { %p1727_p10 = pnand %p1725_p9, %p1722_p8 }
  0x24   : > { %1730 = shalt.err (!%p1727_p10)
}
  0x25   : > { %s1731_s10 = scalar_lea.vmem %s141_s28, 6272  ;;  %p1739_p11 = scmp.lt.s32.totalorder %s141_s28, %s141_s28 }
  0x26   : > { %p1732_p1 = scmp.ne.s32.totalorder %s141_s28, %s1731_s10  ;;  %p1740_p6 = scmp.lt.s32.totalorder %s1731_s10, %s1731_s10 }
  0x28   : > { %p1734_p4 = pnand %p1732_p1, %p1720_p3  ;;  %p1741_p13 = por %p1740_p6, %p1739_p11 }
  0x2a   : > { %p1735_p12 = pneg %p1734_p4 }
  0x2c   : > { %p1742_p5 = pnand %p1741_p13, %p1735_p12 }
  0x2e   : > { %1745 = shalt.err (!%p1742_p5)
}
  0x2f   : > { %s1879_s11 = smov 64   ;;  %s1880_s17 = smov 4  }
  0x30   : > { %1579 = dma.hbm_to_vmem [thread:$0]  (!%p1976_p2), %s2225_s1, 6272, %s141_s28, [#allocation6], %s1879_s11, %s1879_s11, %s1880_s17  }
  0x31   : > { %p1308_p0 = scmp.ge.s32.totalorder %s1876_s15, 4 }
  0x32   : > { %p2238_p7 = scmp.ne.s32.totalorder (!%p1308_p0), %s2232_s22, 0 }
  0x33   : > { %150 = sbr.rel (%p1308_p0) target bundleno = 94 (0x5e), region = 20 }
  0x3a   : > { %153 = sbr.rel (!%p2238_p7) target bundleno = 94 (0x5e), region = 24  ;;  %s154_s27 = sand.u32 (%p2238_p7), 1, %s1872_s14  }
  0x3b   : > { %s1309_s30 = sshll.u32 (%p2238_p7), %s1876_s15, 3  ;;  %s1565_s4 = smul.u32 (%p2238_p7), 224, %s154_s27 }
  0x3c   : > { %s160_s5 = ssub.s32 (%p2238_p7), 25, %s1309_s30  ;;  %s2004_s7 = scalar_lea.sflag (%p2238_p7), [#allocation3], %s154_s27 }
  0x3d   : > { %p161_p4 = scmp.lt.s32.totalorder (%p2238_p7), %s160_s5, 8  ;;  %s158_s28 = scalar_lea.vmem (%p2238_p7), [#allocation2], %s1565_s4 }
  0x41   : > { %s2251_s5 = smov (!%p161_p4, %s160_s5), 8 }
  0x42   : > { %s2001_s6 = smul.u32 448, %s2251_s5 }
  0x44   : > { %s166_s29 = ssub.s32 3584, %s2001_s6 }
  0x45   : > { %167 = vsyncadd %s2004_s7, %s166_s29  ;;  %p1312_p5 = scmp.ne.s32.totalorder %s2001_s6, 0  ;;  %s1566_s22 = smul.u32 3584, %s1876_s15 }
  0x46   : > { %s173_s8 = sshll.u32 %s158_s28, 4  ;;  %s1750_s27 = scalar_lea.hbm %s2224_s0, 11200  ;;  %s2014_s8 = int_to_ptr.vmem [resolvable:$true] %s173_s8 }
  0x47   : > { %s2012_s11 = scalar_lea.hbm %s2224_s0, %s1566_s22 }
  0x48   : > { %s1746_s17 = scalar_lea.hbm %s2012_s11, %s2001_s6  ;;  %p1751_p13 = scmp.lt.u32.totalorder %s2012_s11, %s2224_s0 }
  0x49   : > { %p1747_p6 = scmp.ne.s32.totalorder %s2012_s11, %s1746_s17  ;;  %p1752_p2 = scmp.lt.u32.totalorder %s1750_s27, %s1746_s17 }
  0x4a   : > { %p1754_p8 = scmp.lt.u32.totalorder %s1746_s17, %s2012_s11 }
  0x4b   : > { %p1748_p11 = pnand %p1747_p6, %p1312_p5  ;;  %p1753_p3 = por %p1752_p2, %p1751_p13 }
  0x4d   : > { %p1749_p12 = pneg %p1748_p11  ;;  %p1755_p9 = por %p1754_p8, %p1753_p3 }
  0x4f   : > { %p1756_p10 = pnand %p1755_p9, %p1749_p12 }
  0x51   : > { %1759 = shalt.err (!%p1756_p10)
}
  0x52   : > { %s1760_s5 = scalar_lea.vmem %s2014_s8, %s2001_s6  ;;  %s1881_s29 = smov [#allocation2]  }
  0x53   : > { %p1761_p1 = scmp.ne.s32.totalorder %s2014_s8, %s1760_s5  ;;  %s1764_s28 = sshll.u32 %s1881_s29, 4  ;;  %s1765_s28 = int_to_ptr.vmem [resolvable:$false] %s1764_s28 }
  0x54   : > { %s1766_s22 = scalar_lea.vmem %s1765_s28, 7168  ;;  %p1767_p4 = scmp.lt.s32.totalorder %s2014_s8, %s1765_s28 }
  0x55   : > { %p1762_p0 = pnand %p1761_p1, %p1312_p5  ;;  %p1768_p6 = scmp.lt.s32.totalorder %s1766_s22, %s1760_s5 }
  0x57   : > { %p1763_p7 = pneg %p1762_p0  ;;  %p1769_p11 = por %p1768_p6, %p1767_p4 }
  0x59   : > { %p1770_p13 = pnand %p1769_p11, %p1763_p7 }
  0x5b   : > { %1773 = shalt.err (!%p1770_p13)
}
  0x5c   : > { %s1882_s9 = smov 448   ;;  %s1883_s10 = smov 28  }
  0x5d   : > { %179 = dma.hbm_to_vmem [thread:$0]  (%p1312_p5), %s2012_s11, %s2001_s6, %s2014_s8, %s2004_s7, %s1882_s9, %s1882_s9, %s1883_s10  }
  0x5e PF: > { %p2239_p12 = scmp.ne.s32.totalorder %s2236_s26, 0 }
  0x5f   : > { %s2044_s17 = sand.u32 (!%p2239_p12), 1, %s1868_s13   ;;  %p2240_p2 = scmp.ne.s32.totalorder (!%p2239_p12), %s2233_s23, 0 }
  0x60   : > { %185 = sbr.rel (%p2239_p12) target bundleno = 487 (0x1e7), region = 28  ;;  %s188_s20 = scalar_lea.sflag (!%p2239_p12), [#allocation3], %s2044_s17 }
  0x61   : > { %s1567_s19 = smul.u32 (!%p2239_p12), 224, %s2044_s17 }
  0x63   : > { %s2048_s27 = scalar_lea.vmem (!%p2239_p12), [#allocation2], %s1567_s19 }
  0x67   : > { %1847 = dma.done.wait (%p2240_p2), %s188_s20, 3584  }
  0x68   : > { %1849 = vsyncadd (%p2240_p2), %s188_s20, 4294963712  ;;  %p2241_p5 = scmp.eq.s32.totalorder %s1929_s16, 0 }
  0x6a   : > { %1851 = dma.done.wait (%p2241_p5), [#allocation6], 6272   ;;  %p2242_p3 = pmov %p2241_p5 }
  0x6b   : > { %v1629_v0 = vld [vmem:[#allocation5 + $0x40] sm:$0xff]   ;;  %v1633_v4 = vld [vmem:[#allocation5 + $0x48] sm:$0xff]   ;;  %v1637_v8 = vld [vmem:[#allocation5 + $0x50] sm:$0xff]   ;;  %vm799_vm0 = vcmask 130048   ;;  %s1401_s23 = sshll.u32 %s1929_s16, 6  ;;  %s1318_s26 = sshll.u32 %s2044_s17, 6 }
  0x6c   : > { %1853 = vsyncadd (%p2242_p3), [#allocation6], 4294961024  ;;  %v1630_v1 = vld [vmem:[#allocation5 + $0xc0] sm:$0xff]   ;;  %1414 = vmatprep.subr.bf16.mxu0 %v1629_v0  ;;  %v1634_v5 = vld [vmem:[#allocation5 + $0xc8] sm:$0xff]   ;;  %s2116_s6 = scalar_lea.vmem [#allocation7], %s1318_s26  ;;  %s1319_s7 = sshll.u32 %s2044_s17, 1 }
  0x6d   : > { %v1631_v2 = vld [vmem:[#allocation5] sm:$0xff]   ;;  %1454 = vmatprep.subr.bf16.mxu1 %v1630_v1  ;;  %v1635_v6 = vld [vmem:[#allocation5 + $0x8] sm:$0xff]   ;;  %v1638_v9 = vld [vmem:[#allocation5 + $0xd0] sm:$0xff]   ;;  %vm1149_vm9 = vcmask 1040384   ;;  %s2139_s8 = scalar_lea.vmem [#allocation8], %s1319_s7  ;;  %s1153_s11 = scalar_lea.sflag [#allocation4], %s2044_s17 }
  0x6e   : > { %v1632_v3 = vld [vmem:[#allocation5 + $0x80] sm:$0xff]   ;;  %1415 = vmatpush3.bf16.msra.mxu0 %v1631_v2  ;;  %v1636_v7 = vld [vmem:[#allocation5 + $0x88] sm:$0xff]   ;;  %v1639_v10 = vld [vmem:[#allocation5 + $0x10] sm:$0xff]   ;;  %s1158_s30 = scalar_lea.sflag [#allocation9], %s2044_s17  ;;  %p2243_p8 = scmp.ne.s32.totalorder %s2234_s24, 0 }
  0x6f   : > { %1455 = vmatpush3.bf16.msra.mxu1 %v1632_v3  ;;  %1416 = vmatprep.subr.bf16.mxu0 %v1633_v4  ;;  %v1640_v11 = vld [vmem:[#allocation5 + $0x90] sm:$0xff]   ;;  %v1641_v12 = vld [vmem:[#allocation5 + $0x58] sm:$0xff]   ;;  %v1645_v16 = vld [vmem:[#allocation5 + $0x60] sm:$0xff]   ;;  %s1404_s4 = sshll.u32 (%p2243_p8), %s1929_s16, 3 }
  0x70   : > { %1456 = vmatprep.subr.bf16.mxu1 %v1634_v5  ;;  %v1642_v13 = vld [vmem:[#allocation5 + $0xd8] sm:$0xff]   ;;  %v1646_v17 = vld [vmem:[#allocation5 + $0xe0] sm:$0xff]   ;;  %v1649_v20 = vld [vmem:[#allocation5 + $0x68] sm:$0xff]   ;;  %s1166_s5 = ssub.s32 (%p2243_p8), 25, %s1404_s4 }
  0x71   : > { %v1643_v14 = vld [vmem:[#allocation5 + $0x18] sm:$0xff]   ;;  %v1647_v18 = vld [vmem:[#allocation5 + $0x20] sm:$0xff]   ;;  %v1650_v21 = vld [vmem:[#allocation5 + $0xe8] sm:$0xff]   ;;  %p1167_p9 = scmp.lt.s32.totalorder (%p2243_p8), %s1166_s5, 8 }
  0x72   : > { %1417 = vmatpush3.bf16.msra.mxu0 %v1635_v6  ;;  %v1644_v15 = vld [vmem:[#allocation5 + $0x98] sm:$0xff]   ;;  %v1648_v19 = vld [vmem:[#allocation5 + $0xa0] sm:$0xff]   ;;  %v1651_v22 = vld [vmem:[#allocation5 + $0x28] sm:$0xff]  }
  0x73   : > { %1457 = vmatpush3.bf16.msra.mxu1 %v1636_v7  ;;  %1418 = vmatprep.subr.bf16.mxu0 %v1637_v8  ;;  %v1652_v23 = vld [vmem:[#allocation5 + $0xa8] sm:$0xff]   ;;  %v1653_v24 = vld [vmem:[#allocation5 + $0x70] sm:$0xff]   ;;  %v1657_v28 = vld [vmem:[#allocation5 + $0x78] sm:$0xff]  }
  0x74   : > { %1458 = vmatprep.subr.bf16.mxu1 %v1638_v9  ;;  %v1654_v25 = vld [vmem:[#allocation5 + $0xf0] sm:$0xff]   ;;  %v1658_v29 = vld [vmem:[#allocation5 + $0xf8] sm:$0xff]   ;;  %v1663_v33 = vld [vmem:[%s2048_s27 + $0x4] ss:$28 sps:$4 sm:$0xff]  }
  0x75   : > { %v1655_v26 = vld [vmem:[#allocation5 + $0x30] sm:$0xff]   ;;  %v1659_v30 = vld [vmem:[#allocation5 + $0x38] sm:$0xff]   ;;  %v1664_v34 = vld [vmem:[%s2048_s27 + $0x8] ss:$28 sps:$4 sm:$0xff]   ;;  %844 = vmatprep.mubr.bf16.mxu0 %v1663_v33 }
  0x76   : > { %1419 = vmatpush3.bf16.msra.mxu0 %v1639_v10  ;;  %v1656_v27 = vld [vmem:[#allocation5 + $0xb0] sm:$0xff]   ;;  %v1660_v31 = vld [vmem:[#allocation5 + $0xb8] sm:$0xff]   ;;  %v1666_v35 = vld [vmem:[%s2048_s27 + $0xc] ss:$28 sps:$4 sm:$0xff]  }
  0x77   : > { %1459 = vmatpush3.bf16.msra.mxu1 %v1640_v11  ;;  %1420 = vmatprep.subr.bf16.mxu0 %v1641_v12  ;;  %v1661_v32 = vld [vmem:[%s2048_s27] ss:$28 sps:$4 sm:$0xff]   ;;  %v1669_v38 = vld [vmem:[#allocation5 + $0x148] sm:$0xff]   ;;  %v1675_v42 = vld [vmem:[%s2048_s27 + $0x38] ss:$28 sps:$4 sm:$0xff]  }
  0x78   : > { %1460 = vmatprep.subr.bf16.mxu1 %v1642_v13  ;;  %v1667_v36 = vld [vmem:[#allocation5 + $0x140] sm:$0xff]   ;;  %909 = vmatprep.mubr.bf16.mxu1 %v1666_v35  ;;  %v1670_v39 = vld [vmem:[#allocation5 + $0x108] sm:$0xff]   ;;  %v1671_v40 = vld [vmem:[%s2048_s27 + $0x3c] ss:$28 sps:$4 sm:$0xff]  }
  0x79   : > { %v1668_v37 = vld [vmem:[#allocation5 + $0x100] sm:$0xff]   ;;  %v1677_v44 = vld [vmem:[#allocation5 + $0x150] sm:$0xff]   ;;  %v1679_v46 = vld [vmem:[#allocation5 + $0x158] sm:$0xff]  }
  0x7a   : > { %1421 = vmatpush3.bf16.msra.mxu0 %v1643_v14  ;;  %v1673_v41 = vld [vmem:[%s2048_s27 + $0x44] ss:$28 sps:$4 sm:$0xff]   ;;  %v1678_v45 = vld [vmem:[#allocation5 + $0x110] sm:$0xff]   ;;  %v1680_v47 = vld [vmem:[#allocation5 + $0x118] sm:$0xff]  }
  0x7b   : > { %1461 = vmatpush3.bf16.msra.mxu1 %v1644_v15  ;;  %1422 = vmatprep.subr.bf16.mxu0 %v1645_v16  ;;  %v1676_v43 = vld [vmem:[%s2048_s27 + $0x40] ss:$28 sps:$4 sm:$0xff]   ;;  %v1681_v48 = vld [vmem:[%s2048_s27 + $0x74] ss:$28 sps:$4 sm:$0xff]   ;;  %v1689_v54 = vld [vmem:[#allocation5 + $0x168] sm:$0xff]  }
  0x7c   : > { %1462 = vmatprep.subr.bf16.mxu1 %v1646_v17  ;;  %v1683_v49 = vld [vmem:[%s2048_s27 + $0x7c] ss:$28 sps:$4 sm:$0xff]   ;;  %v1685_v50 = vld [vmem:[%s2048_s27 + $0x70] ss:$28 sps:$4 sm:$0xff]   ;;  %v1687_v51 = vld [vmem:[#allocation5 + $0x160] sm:$0xff]  }
  0x7d   : > { %v1686_v52 = vld [vmem:[%s2048_s27 + $0x78] ss:$28 sps:$4 sm:$0xff]   ;;  %v1688_v53 = vld [vmem:[#allocation5 + $0x120] sm:$0xff]   ;;  %v1691_v55 = vld [vmem:[%s2048_s27 + $0xac] ss:$28 sps:$4 sm:$0xff]  }
  0x7e   : > { %1423 = vmatpush3.bf16.msra.mxu0 %v1647_v18  ;;  %v1693_v56 = vld [vmem:[%s2048_s27 + $0xb4] ss:$28 sps:$4 sm:$0xff]   ;;  %v1690_v57 = vld [vmem:[#allocation5 + $0x128] sm:$0xff]   ;;  %v1699_v62 = vld [vmem:[#allocation5 + $0x178] sm:$0xff]  }
  0x7f   : > { %1463 = vmatpush3.bf16.msra.mxu1 %v1648_v19  ;;  %1424 = vmatprep.subr.bf16.mxu0 %v1649_v20  ;;  %v1697_v58 = vld [vmem:[#allocation5 + $0x170] sm:$0xff]   ;;  %v1695_v59 = vld [vmem:[%s2048_s27 + $0xa8] ss:$28 sps:$4 sm:$0xff]   ;;  %v1706_v0 = vld [vmem:[%s2048_s27 + $0xbc] ss:$28 sps:$4 sm:$0xff]  }
  0x80   : > { %1464 = vmatprep.subr.bf16.mxu1 %v1650_v21  ;;  %v1696_v60 = vld [vmem:[%s2048_s27 + $0xb0] ss:$28 sps:$4 sm:$0xff]   ;;  %v1700_v1 = vld [vmem:[#allocation5 + $0x138] sm:$0xff]   ;;  %v1707_v3 = vld [vmem:[#allocation5 + $0x180] sm:$0xff]  }
  0x81   : > { %v1698_v61 = vld [vmem:[#allocation5 + $0x130] sm:$0xff]   ;;  %v1708_v5 = vld [vmem:[%s2048_s27 + $0x4c] ss:$28 sps:$4 sm:$0xff]   ;;  %v1713_v9 = vld [vmem:[%s2048_s27 + $0x84] ss:$28 sps:$4 sm:$0xff]  }
  0x82   : > { %1425 = vmatpush3.bf16.msra.mxu0 %v1651_v22  ;;  %v1703_v63 = vld [vmem:[%s2048_s27 + $0x14] ss:$28 sps:$4 sm:$0xff]   ;;  %v1711_v7 = vld [vmem:[%s2048_s27 + $0x48] ss:$28 sps:$4 sm:$0xff]   ;;  %v1716_v11 = vld [vmem:[%s2048_s27 + $0x80] ss:$28 sps:$4 sm:$0xff]  }
  0x83   : > { %1465 = vmatpush3.bf16.msra.mxu1 %v1652_v23  ;;  %1426 = vmatprep.subr.bf16.mxu0 %v1653_v24  ;;  %v1701_v2 = vld [vmem:[%s2048_s27 + $0x10] ss:$28 sps:$4 sm:$0xff]   ;;  %v1704_v4 = vld [vmem:[%s2048_s27 + $0xb8] ss:$28 sps:$4 sm:$0xff]   ;;  %v1715_v10 = vld [vmem:[%s2048_s27 + $0x88] ss:$28 sps:$4 sm:$0xff]  }
  0x84   : > { %1466 = vmatprep.subr.bf16.mxu1 %v1654_v25  ;;  %v1710_v6 = vld [vmem:[%s2048_s27 + $0x18] ss:$28 sps:$4 sm:$0xff]   ;;  %v1712_v8 = vld [vmem:[%s2048_s27 + $0x50] ss:$28 sps:$4 sm:$0xff]   ;;  %v1717_v12 = vld [vmem:[%s2048_s27 + $0xc0] ss:$28 sps:$4 sm:$0xff]  }
  0x86   : > { %1427 = vmatpush3.bf16.msra.mxu0 %v1655_v26 }
  0x87   : > { %1467 = vmatpush3.bf16.msra.mxu1 %v1656_v27  ;;  %1428 = vmatprep.subr.bf16.mxu0 %v1657_v28 }
  0x88   : > { %1468 = vmatprep.subr.bf16.mxu1 %v1658_v29 }
  0x8a   : > { %1429 = vmatpush3.bf16.msra.mxu0 %v1659_v30 }
  0x8b   : > { %1469 = vmatpush3.bf16.msra.mxu1 %v1660_v31  ;;  %1494 = vmatprep.subr.bf16.mxu0 %v1667_v36 }
  0x8c   : > { %1549 = vmatprep.subr.bf16.mxu1 %v1667_v36 }
  0x8d   : > { %845 = vmatmul.mubr.bf16.vlgmr.msra.gmra.mrb[0].mxu0 %v1661_v32 }
  0x8e   : > { %910 = vmatmul.mubr.bf16.vlgmr.msra.gmra.mrb[0].mxu1 %v1664_v34  ;;  %1495 = vmatpush3.bf16.msra.mxu0 %v1668_v37 }
  0x8f   : > { %1557 = vmatpush3.bf16.msra.mxu1 %v1668_v37  ;;  %1496 = vmatprep.subr.bf16.mxu0 %v1669_v38 }
  0x90   : > { %1550 = vmatprep.subr.bf16.mxu1 %v1669_v38  ;;  %852 = vmatprep.mubr.bf16.mxu0 %v1671_v40 }
  0x91   : > { %917 = vmatprep.mubr.bf16.mxu1 %v1673_v41 }
  0x92   : > { %1497 = vmatpush3.bf16.msra.mxu0 %v1670_v39 }
  0x93   : > { %1558 = vmatpush3.bf16.msra.mxu1 %v1670_v39  ;;  %1498 = vmatprep.subr.bf16.mxu0 %v1677_v44 }
  0x94   : > { %1551 = vmatprep.subr.bf16.mxu1 %v1677_v44 }
  0x95   : > { %853 = vmatmul.mubr.bf16.gmra.mrb[4].mxu0 %v1675_v42 }
  0x96   : > { %918 = vmatmul.mubr.bf16.gmra.mrb[4].mxu1 %v1676_v43  ;;  %1499 = vmatpush3.bf16.msra.mxu0 %v1678_v45 }
  0x97   : > { %1559 = vmatpush3.bf16.msra.mxu1 %v1678_v45  ;;  %1500 = vmatprep.subr.bf16.mxu0 %v1679_v46 }
  0x98   : > { %1552 = vmatprep.subr.bf16.mxu1 %v1679_v46  ;;  %860 = vmatprep.mubr.bf16.mxu0 %v1681_v48 }
  0x99   : > { %925 = vmatprep.mubr.bf16.mxu1 %v1683_v49 }
  0x9a   : > { %1501 = vmatpush3.bf16.msra.mxu0 %v1680_v47 }
  0x9b   : > { %1560 = vmatpush3.bf16.msra.mxu1 %v1680_v47  ;;  %1502 = vmatprep.subr.bf16.mxu0 %v1687_v51 }
  0x9c   : > { %1553 = vmatprep.subr.bf16.mxu1 %v1687_v51 }
  0x9d   : > { %861 = vmatmul.mubr.bf16.gmra.mrb[8].mxu0 %v1685_v50 }
  0x9e   : > { %926 = vmatmul.mubr.bf16.gmra.mrb[8].mxu1 %v1686_v52  ;;  %1503 = vmatpush3.bf16.msra.mxu0 %v1688_v53 }
  0x9f   : > { %868 = vmatprep.mubr.bf16.mxu0 %v1691_v55  ;;  %1561 = vmatpush3.bf16.msra.mxu1 %v1688_v53 }
  0xa0   : > { %1504 = vmatprep.subr.bf16.mxu0 %v1689_v54  ;;  %1554 = vmatprep.subr.bf16.mxu1 %v1689_v54 }
  0xa1   : > { %933 = vmatprep.mubr.bf16.mxu1 %v1693_v56 }
  0xa2   : > { %1505 = vmatpush3.bf16.msra.mxu0 %v1690_v57 }
  0xa3   : > { %1562 = vmatpush3.bf16.msra.mxu1 %v1690_v57  ;;  %1506 = vmatprep.subr.bf16.mxu0 %v1697_v58 }
  0xa4   : > { %1555 = vmatprep.subr.bf16.mxu1 %v1697_v58 }
  0xa5   : > { %869 = vmatmul.mubr.bf16.gmra.mrb[12].mxu0 %v1695_v59 }
  0xa6   : > { %934 = vmatmul.mubr.bf16.gmra.mrb[12].mxu1 %v1696_v60  ;;  %974 = vmatprep.mubr.bf16.mxu0 %v1703_v63 }
  0xa7   : > { %1507 = vmatpush3.bf16.msra.mxu0 %v1698_v61  ;;  %1563 = vmatpush3.bf16.msra.mxu1 %v1698_v61 }
  0xa8   : > { %1508 = vmatprep.subr.bf16.mxu0 %v1699_v62  ;;  %1556 = vmatprep.subr.bf16.mxu1 %v1699_v62 }
  0xa9   : > { %998 = vmatprep.mubr.bf16.mxu1 %v1706_v0 }
  0xab   : > { %1509 = vmatpush3.bf16.msra.mxu0 %v1700_v1  ;;  %1564 = vmatpush3.bf16.msra.mxu1 %v1700_v1 }
  0xac   : > { %1539 = vmatprep.subr.bf16.mxu1 %v1707_v3 }
  0xae   : > { %975 = vmatmul.mubr.bf16.vlgmr.msra.gmra.mrb[16].mxu0 %v1701_v2  ;;  %999 = vmatmul.mubr.bf16.vlgmr.msra.gmra.mrb[16].mxu1 %v1704_v4  ;;  %v1081_v4 = vlaneseq }
  0xaf   : > { %982 = vmatprep.mubr.bf16.mxu0 %v1708_v5  ;;  %1540 = vmatpush3.bf16.msra.mxu1 %v1707_v3 }
  0xb0   : > { %1541 = vmatprep.mubr.msk.bf16.mxu1 %vm799_vm0, %v1710_v6 }
  0xb6   : > { %983 = vmatmul.mubr.bf16.gmra.mrb[20].mxu0 %v1711_v7  ;;  %1542 = vmatmul.mubr.msk.bf16.vlgmr.msra.gmra.mrb[20].mxu1 %vm799_vm0, %v1712_v8  ;;  %v2101_v7 = vshrl.u32 %v1081_v4, 7 }
  0xb7   : > { %990 = vmatprep.mubr.bf16.mxu0 %v1713_v9  ;;  %1545 = vmatprep.mubr.msk.bf16.mxu1 %vm799_vm0, %v1715_v10 }
  0xbe   : > { %991 = vmatmul.mubr.bf16.gmra.mrb[24].mxu0 %v1716_v11  ;;  %1546 = vmatmul.mubr.msk.bf16.gmra.mrb[24].mxu1 %vm799_vm0, %v1717_v12 }
 0x160   : > { %v1430_v13 = vpop.f32.mrb[0].mxu0 }
 0x161   : > { %v1470_v14 = vpop.f32.mrb[0].mxu1  ;;  %v1431_v15 = vpop.f32.mrb[1].mxu0 }
 0x162   : > { %v1432_v16 = vadd.f32 %v1431_v15, %v1430_v13  ;;  %v1471_v17 = vpop.f32.mrb[1].mxu1  ;;  %v1433_v18 = vpop.f32.mrb[2].mxu0 }
 0x163   : > { %v1472_v19 = vadd.f32 %v1471_v17, %v1470_v14  ;;  %v1473_v20 = vpop.f32.mrb[2].mxu1  ;;  %v1434_v21 = vpop.f32.mrb[3].mxu0 }
 0x164   : > { %v1435_v22 = vadd.f32 %v1434_v21, %v1433_v18  ;;  %v1474_v23 = vpop.f32.mrb[3].mxu1 }
 0x165   : > { %v912_v24 = vadd.f32 %v1472_v19, %v1432_v16  ;;  %v1475_v25 = vadd.f32 %v1474_v23, %v1473_v20  ;;  %v2103_v16 = vstv %s1401_s23  ;;  %v1083_v20 = vadd.s32 8, %v2101_v7 }
 0x167   : > { %v2090_v26 = vadd.f32 %v1475_v25, %v1435_v22  ;;  %v1084_v22 = vadd.s32 16, %v2101_v7  ;;  %v1091_v25 = vadd.s32 %v2103_v16, %v2101_v7 }
 0x168   : > { %v1436_v27 = vpop.f32.mrb[4].mxu0 }
 0x169   : > { %v1476_v28 = vpop.f32.mrb[4].mxu1  ;;  %v1437_v29 = vpop.f32.mrb[5].mxu0  ;;  %vm1099_vm1 = vcmp.lt.s32.totalorder %v1091_v25, 200 }
 0x16a   : > { %v1438_v30 = vadd.f32 %v1437_v29, %v1436_v27  ;;  %v1477_v31 = vpop.f32.mrb[5].mxu1  ;;  %v1439_v32 = vpop.f32.mrb[6].mxu0 }
 0x16b   : > { %v1478_v33 = vadd.f32 %v1477_v31, %v1476_v28  ;;  %v1479_v34 = vpop.f32.mrb[6].mxu1  ;;  %v1440_v35 = vpop.f32.mrb[7].mxu0  ;;  %v1085_v28 = vadd.s32 24, %v2101_v7  ;;  %v1092_v31 = vadd.s32 %v2103_v16, %v1083_v20 }
 0x16c   : > { %v1441_v36 = vadd.f32 %v1440_v35, %v1439_v32  ;;  %v1480_v37 = vpop.f32.mrb[7].mxu1 }
 0x16d   : > { %v2092_v38 = vadd.f32 %v1478_v33, %v1438_v30  ;;  %v1481_v39 = vadd.f32 %v1480_v37, %v1479_v34  ;;  %v1093_v33 = vadd.s32 %v2103_v16, %v1084_v22  ;;  %vm1100_vm2 = vcmp.lt.s32.totalorder %v1092_v31, 200 }
 0x16f   : > { %v2094_v40 = vadd.f32 %v1481_v39, %v1441_v36  ;;  %vm1101_vm3 = vcmp.lt.s32.totalorder %v1093_v33, 200 }
 0x170   : > { %v1442_v41 = vpop.f32.mrb[8].mxu0 }
 0x171   : > { %v1482_v42 = vpop.f32.mrb[8].mxu1  ;;  %v1443_v43 = vpop.f32.mrb[9].mxu0 }
 0x172   : > { %v1444_v44 = vadd.f32 %v1443_v43, %v1442_v41  ;;  %v1483_v45 = vpop.f32.mrb[9].mxu1  ;;  %v1445_v46 = vpop.f32.mrb[10].mxu0 }
 0x173   : > { %v1484_v47 = vadd.f32 %v1483_v45, %v1482_v42  ;;  %v1485_v48 = vpop.f32.mrb[10].mxu1  ;;  %v1446_v49 = vpop.f32.mrb[11].mxu0 }
 0x174   : > { %v1447_v50 = vadd.f32 %v1446_v49, %v1445_v46  ;;  %v1486_v51 = vpop.f32.mrb[11].mxu1 }
 0x175   : > { %v2096_v52 = vadd.f32 %v1484_v47, %v1444_v44  ;;  %v1487_v53 = vadd.f32 %v1486_v51, %v1485_v48  ;;  %v1086_v47 = vadd.s32 32, %v2101_v7 }
 0x177   : > { %v2098_v54 = vadd.f32 %v1487_v53, %v1447_v50  ;;  %v1088_v50 = vadd.s32 48, %v2101_v7  ;;  %v1087_v53 = vadd.s32 40, %v2101_v7 }
 0x178   : > { %v1448_v55 = vpop.f32.mrb[12].mxu0 }
 0x179   : > { %v1488_v56 = vpop.f32.mrb[12].mxu1  ;;  %v1449_v57 = vpop.f32.mrb[13].mxu0 }
 0x17a   : > { %v1450_v58 = vadd.f32 %v1449_v57, %v1448_v55  ;;  %v1489_v59 = vpop.f32.mrb[13].mxu1  ;;  %v1451_v60 = vpop.f32.mrb[14].mxu0 }
 0x17b   : > { %v1490_v61 = vadd.f32 %v1489_v59, %v1488_v56  ;;  %v1491_v62 = vpop.f32.mrb[14].mxu1  ;;  %v1452_v63 = vpop.f32.mrb[15].mxu0 }
 0x17c   : > { %v1453_v0 = vadd.f32 %v1452_v63, %v1451_v60  ;;  %v1492_v1 = vpop.f32.mrb[15].mxu1  ;;  %v1089_v63 = vadd.s32 56, %v2101_v7 }
 0x17d   : > { %v936_v2 = vadd.f32 %v1490_v61, %v1450_v58  ;;  %v1493_v3 = vadd.f32 %v1492_v1, %v1491_v62 }
 0x17e   : > { %v1098_v20 = vadd.s32 %v2103_v16, %v1089_v63 }
 0x17f   : > { %v939_v5 = vadd.f32 %v1493_v3, %v1453_v0 }
 0x180   : > { %vm1106_vm8 = vcmp.lt.s32.totalorder %v1098_v20, 200 }
 0x181   : > { %v1510_v6 = vpop.f32.mrb[16].mxu0  ;;  %v1528_v8 = vpop.f32.mrb[16].mxu1 }
 0x182   : > { %v1511_v9 = vpop.f32.mrb[17].mxu0  ;;  %v1529_v11 = vpop.f32.mrb[17].mxu1 }
 0x183   : > { %v1512_v10 = vadd.f32 %v1511_v9, %v1510_v6  ;;  %v1513_v12 = vpop.f32.mrb[18].mxu0  ;;  %v1530_v13 = vadd.f32 %v1529_v11, %v1528_v8  ;;  %v1531_v14 = vpop.f32.mrb[18].mxu1  ;;  %v1097_v6 = vadd.s32 %v2103_v16, %v1088_v50 }
 0x184   : > { %v1514_v15 = vpop.f32.mrb[19].mxu0  ;;  %v1532_v18 = vpop.f32.mrb[19].mxu1 }
 0x185   : > { %v1515_v17 = vadd.f32 %v1514_v15, %v1513_v12  ;;  %v977_v19 = vadd.f32 %v1512_v10, %v912_v24  ;;  %v1533_v21 = vadd.f32 %v1532_v18, %v1531_v14  ;;  %v1001_v23 = vadd.f32 %v1530_v13, %v936_v2 }
 0x186   : > { %v1096_v14 = vadd.s32 %v2103_v16, %v1087_v53  ;;  %vm1105_vm6 = vcmp.lt.s32.totalorder %v1097_v6, 200 }
 0x187   : > { %v980_v27 = vadd.f32 %v1515_v17, %v2090_v26  ;;  %v1004_v29 = vadd.f32 %v1533_v21, %v939_v5  ;;  %v1094_v26 = vadd.s32 %v2103_v16, %v1085_v28 }
 0x188   : > { %vm1104_vm7 = vcmp.lt.s32.totalorder %v1096_v14, 200 }
 0x189   : > { %v1516_v30 = vpop.f32.mrb[20].mxu0  ;;  %v1543_v32 = vpop.f32.mrb[20].mxu1  ;;  %vm1102_vm4 = vcmp.lt.s32.totalorder %v1094_v26, 200 }
 0x18a   : > { %v1517_v24 = vpop.f32.mrb[21].mxu0  ;;  %v1041_v35 = vpop.f32.mrb[21].mxu1 }
 0x18b   : > { %v1518_v34 = vadd.f32 %v1517_v24, %v1516_v30  ;;  %v1519_v36 = vpop.f32.mrb[22].mxu0  ;;  %v1042_v37 = vadd.f32 %v1041_v35, %v977_v19  ;;  %v1544_v39 = vpop.f32.mrb[22].mxu1 }
 0x18c   : > { %v1520_v41 = vpop.f32.mrb[23].mxu0  ;;  %v1044_v44 = vpop.f32.mrb[23].mxu1 }
 0x18d   : > { %v985_v42 = vadd.f32 %v1518_v34, %v2092_v38  ;;  %v1521_v43 = vadd.f32 %v1520_v41, %v1519_v36  ;;  %1072 = vst [vmem:[%s2116_s6] sm:$0xff] %v1042_v37  ;;  %v1107_v45 = vsel %vm1099_vm1, %v1042_v37, 0.0  ;;  %v1045_v46 = vadd.f32 %v1044_v44, %v980_v27 }
 0x18e   : > { %v1128_v38 = vmul.f32 %v1107_v45, %v1107_v45 }
 0x18f   : > { %v1050_v48 = vadd.f32 %v1543_v32, %v985_v42  ;;  %v988_v49 = vadd.f32 %v1521_v43, %v2094_v40  ;;  %1073 = vst [vmem:[%s2116_s6 + $0x8] sm:$0xff] %v1045_v46  ;;  %v1108_v51 = vsel %vm1100_vm2, %v1045_v46, 0.0  ;;  %v1095_v40 = vadd.s32 %v2103_v16, %v1086_v47 }
 0x190   : > { %v1115_v57 = vadd.f32 %v1108_v51, %v1107_v45  ;;  %v1129_v58 = vmul.f32 %v1108_v51, %v1108_v51 }
 0x191   : > { %1074 = vst [vmem:[%s2116_s6 + $0x10] sm:$0xff] %v1050_v48  ;;  %v1053_v55 = vadd.f32 %v1544_v39, %v988_v49  ;;  %v1109_v56 = vsel %vm1101_vm3, %v1050_v48, 0.0  ;;  %v1522_v59 = vpop.f32.mrb[24].mxu0  ;;  %v1547_v61 = vpop.f32.mrb[24].mxu1  ;;  %vm1103_vm5 = vcmp.lt.s32.totalorder %v1095_v40, 200 }
 0x192   : > { %v1130_v60 = vmul.f32 %v1109_v56, %v1109_v56  ;;  %v1523_v62 = vpop.f32.mrb[25].mxu0  ;;  %v1116_v0 = vadd.f32 %v1115_v57, %v1109_v56  ;;  %v1136_v1 = vadd.f32 %v1129_v58, %v1128_v38  ;;  %v1066_v2 = vadd.f32 %v1547_v61, %v1001_v23  ;;  %v1057_v4 = vpop.f32.mrb[25].mxu1 }
 0x193   : > { %1075 = vst [vmem:[%s2116_s6 + $0x18] sm:$0xff] %v1053_v55  ;;  %v1524_v3 = vadd.f32 %v1523_v62, %v1522_v59  ;;  %v1525_v5 = vpop.f32.mrb[26].mxu0  ;;  %v1110_v8 = vsel %vm1102_vm4, %v1053_v55, 0.0  ;;  %v1548_v9 = vpop.f32.mrb[26].mxu1 }
 0x194   : > { %v1526_v10 = vpop.f32.mrb[27].mxu0  ;;  %v1137_v11 = vadd.f32 %v1136_v1, %v1130_v60  ;;  %1078 = vst [vmem:[%s2116_s6 + $0x30] sm:$0xff] %v1066_v2  ;;  %v1117_v7 = vadd.f32 %v1116_v0, %v1110_v8  ;;  %v1060_v13 = vpop.f32.mrb[27].mxu1  ;;  %v1131_v15 = vmul.f32 %v1110_v8, %v1110_v8  ;;  %v1069_v17 = vadd.f32 %v1548_v9, %v1004_v29 }
 0x195   : > { %v993_v12 = vadd.f32 %v1524_v3, %v2096_v52  ;;  %v1527_v18 = vadd.f32 %v1526_v10, %v1525_v5  ;;  %v1113_v28 = vsel %vm1105_vm6, %v1066_v2, 0.0 }
 0x196   : > { %v1138_v21 = vadd.f32 %v1137_v11, %v1131_v15  ;;  %1079 = vst [vmem:[%s2116_s6 + $0x38] sm:$0xff] %v1069_v17  ;;  %v1114_v24 = vsel %vm1106_vm8, %v1069_v17, 0.0  ;;  %v1134_v16 = vmul.f32 %v1113_v28, %v1113_v28 }
 0x197   : > { %v1058_v19 = vadd.f32 %v1057_v4, %v993_v12  ;;  %v996_v22 = vadd.f32 %v1527_v18, %v2098_v54  ;;  %v1135_v54 = vmul.f32 %v1114_v24, %v1114_v24 }
 0x199   : > { %1076 = vst [vmem:[%s2116_s6 + $0x20] sm:$0xff] %v1058_v19  ;;  %v1111_v23 = vsel %vm1103_vm5, %v1058_v19, 0.0  ;;  %v1061_v27 = vadd.f32 %v1060_v13, %v996_v22 }
 0x19a   : > { %v1118_v52 = vadd.f32 %v1117_v7, %v1111_v23  ;;  %v1132_v25 = vmul.f32 %v1111_v23, %v1111_v23 }
 0x19b   : > { %1077 = vst [vmem:[%s2116_s6 + $0x28] sm:$0xff] %v1061_v27  ;;  %v1112_v29 = vsel %vm1104_vm7, %v1061_v27, 0.0 }
 0x19c   : > { %v1139_v30 = vadd.f32 %v1138_v21, %v1132_v25  ;;  %v1119_v31 = vadd.f32 %v1118_v52, %v1112_v29  ;;  %v1133_v32 = vmul.f32 %v1112_v29, %v1112_v29 }
 0x19e   : > { %v1120_v33 = vadd.f32 %v1119_v31, %v1113_v28  ;;  %v1140_v34 = vadd.f32 %v1139_v30, %v1133_v32 }
 0x1a0   : > { %v1121_v35 = vadd.f32 %v1120_v33, %v1114_v24  ;;  %v1141_v36 = vadd.f32 %v1140_v34, %v1134_v16 }
 0x1a2   : > { %v1122_v37 = vrot.slane %v1121_v35, 4  ;;  %v1142_v39 = vadd.f32 %v1141_v36, %v1135_v54 }
 0x1a4   : > { %v1123_v41 = vadd.f32 %v1122_v37, %v1121_v35  ;;  %v1143_v26 = vrot.slane %v1142_v39, 4 }
 0x1a6   : > { %v1124_v42 = vrot.slane %v1123_v41, 2  ;;  %v1144_v43 = vadd.f32 %v1143_v26, %v1142_v39 }
 0x1a8   : > { %v1125_v44 = vadd.f32 %v1124_v42, %v1123_v41  ;;  %v1145_v45 = vrot.slane %v1144_v43, 2 }
 0x1aa   : > { %v1126_v46 = vrot.slane %v1125_v44, 1  ;;  %v1146_v47 = vadd.f32 %v1145_v45, %v1144_v43 }
 0x1ab   : > { %1164 = sbr.rel (!%p2243_p8) target bundleno = 462 (0x1ce), region = 40 }
 0x1ac   : > { %v1147_v48 = vrot.slane %v1146_v47, 1  ;;  %v1127_v49 = vadd.f32 %v1126_v46, %v1125_v44 }
 0x1ae   : > { %v1148_v50 = vadd.f32 %v1147_v48, %v1146_v47 }
 0x1b0   : > { %v1150_v38 = vsel %vm1149_vm9, %v1127_v49, %v1148_v50 }
 0x1b1   : > { %1151 = vst [vmem:[%s2139_s8] sm:$0x3] %v1150_v38 }
 0x1b2   : > { %s2253_s5 = smov (!%p1167_p9, %s1166_s5), 8 }
 0x1b3   : > { %s2147_s29 = sshll.u32 %s2253_s5, 7 }
 0x1b4   : > { %s1171_s28 = ssub.s32 1024, %s2147_s29 }
 0x1b5   : > { %1172 = vsyncadd %s1153_s11, %s1171_s28  ;;  %p1406_p10 = scmp.ne.s32.totalorder %s2147_s29, 0  ;;  %s1413_s22 = sshll.u32 %s1929_s16, 10 }
 0x1b6   : > { %s2157_s19 = scalar_lea.hbm %s2226_s2, %s1413_s22  ;;  %s1177_s20 = sshll.u32 %s2116_s6, 4  ;;  %s2160_s20 = int_to_ptr.vmem [resolvable:$true] %s1177_s20 }
 0x1b7   : > { %s1774_s27 = scalar_lea.vmem %s2160_s20, %s2147_s29  ;;  %s1884_s23 = smov [#allocation7]  }
 0x1b8   : > { %p1775_p1 = scmp.ne.s32.totalorder %s2160_s20, %s1774_s27  ;;  %s1778_s26 = sshll.u32 %s1884_s23, 4  ;;  %s1779_s26 = int_to_ptr.vmem [resolvable:$false] %s1778_s26 }
 0x1b9   : > { %s1780_s7 = scalar_lea.vmem %s1779_s26, 2048  ;;  %p1781_p4 = scmp.lt.s32.totalorder %s2160_s20, %s1779_s26 }
 0x1ba   : > { %p1776_p0 = pnand %p1775_p1, %p1406_p10  ;;  %p1782_p6 = scmp.lt.s32.totalorder %s1780_s7, %s1774_s27 }
 0x1bc   : > { %p1777_p7 = pneg %p1776_p0  ;;  %p1783_p11 = por %p1782_p6, %p1781_p4 }
 0x1be   : > { %p1784_p13 = pnand %p1783_p11, %p1777_p7 }
 0x1c0   : > { %1787 = shalt.err (!%p1784_p13)
}
 0x1c1   : > { %s1788_s6 = scalar_lea.hbm %s2157_s19, %s2147_s29  ;;  %s1792_s28 = scalar_lea.hbm %s2226_s2, 3200 }
 0x1c2   : > { %p1789_p12 = scmp.ne.s32.totalorder %s2157_s19, %s1788_s6  ;;  %p1793_p3 = scmp.lt.u32.totalorder %s2157_s19, %s2226_s2 }
 0x1c3   : > { %p1794_p8 = scmp.lt.u32.totalorder %s1792_s28, %s1788_s6  ;;  %p1796_p1 = scmp.lt.u32.totalorder %s1788_s6, %s2157_s19 }
 0x1c4   : > { %p1790_p2 = pnand %p1789_p12, %p1406_p10 }
 0x1c5   : > { %p1795_p9 = por %p1794_p8, %p1793_p3 }
 0x1c6   : > { %p1791_p5 = pneg %p1790_p2 }
 0x1c7   : > { %p1797_p0 = por %p1796_p1, %p1795_p9 }
 0x1c9   : > { %p1798_p7 = pnand %p1797_p0, %p1791_p5 }
 0x1cb   : > { %1801 = shalt.err (!%p1798_p7)
}
 0x1cc   : > { %s1885_s10 = smov 128   ;;  %s1886_s27 = smov 8  }
 0x1cd   : > { %1183 = dma.vmem_to_hbm [thread:$0]  (%p1406_p10), %s2160_s20, %s2147_s29, %s2157_s19, %s1153_s11, %s1885_s10, %s1885_s10, %s1886_s27  }
 0x1ce PF: > { %s1410_s23 = sshll.u32 %s1929_s16, 5  ;;  %s1193_s26 = sshll.u32 %s2139_s8, 4  ;;  %s1194_s26 = int_to_ptr.vmem [resolvable:$true] %s1193_s26 }
 0x1cf   : > { %s1191_s4 = scalar_lea.hbm %s2227_s3, %s1410_s23  ;;  %s1802_s5 = scalar_lea.vmem %s1194_s26, 32 }
 0x1d0   : > { %p1803_p4 = scmp.ne.s32.totalorder %s1194_s26, %s1802_s5  ;;  %p2244_p6 = scmp.ne.s32.totalorder %s2234_s24, 0 }
 0x1d1   : > { %s1887_s28 = smov [#allocation8]  }
 0x1d2   : > { %p1804_p11 = pnand %p1803_p4, %p2244_p6  ;;  %s1806_s22 = sshll.u32 %s1887_s28, 4  ;;  %s1807_s22 = int_to_ptr.vmem [resolvable:$false] %s1806_s22 }
 0x1d3   : > { %s1808_s11 = scalar_lea.vmem %s1807_s22, 64  ;;  %p1809_p10 = scmp.lt.s32.totalorder %s1194_s26, %s1807_s22 }
 0x1d4   : > { %p1805_p13 = pneg %p1804_p11  ;;  %p1810_p12 = scmp.lt.s32.totalorder %s1808_s11, %s1802_s5 }
 0x1d6   : > { %p1811_p2 = por %p1810_p12, %p1809_p10 }
 0x1d8   : > { %p1812_p5 = pnand %p1811_p2, %p1805_p13 }
 0x1da   : > { %1815 = shalt.err (!%p1812_p5)
}
 0x1db   : > { %s1816_s16 = scalar_lea.hbm %s1191_s4, 32  ;;  %s1820_s19 = scalar_lea.hbm %s2227_s3, 128 }
 0x1dc   : > { %p1817_p3 = scmp.ne.s32.totalorder %s1191_s4, %s1816_s16  ;;  %p1821_p1 = scmp.lt.u32.totalorder %s1191_s4, %s2227_s3 }
 0x1dd   : > { %p1822_p0 = scmp.lt.u32.totalorder %s1820_s19, %s1816_s16  ;;  %p1824_p4 = scmp.lt.u32.totalorder %s1816_s16, %s1191_s4 }
 0x1de   : > { %p1818_p8 = pnand %p1817_p3, %p2244_p6 }
 0x1df   : > { %p1823_p7 = por %p1822_p0, %p1821_p1 }
 0x1e0   : > { %p1819_p9 = pneg %p1818_p8 }
 0x1e1   : > { %p1825_p11 = por %p1824_p4, %p1823_p7 }
 0x1e3   : > { %p1826_p13 = pnand %p1825_p11, %p1819_p9 }
 0x1e5   : > { %1829 = shalt.err (!%p1826_p13)
}
 0x1e6   : > { %1573 = dma.vmem_to_hbm [thread:$0]  (%p2244_p6), %s1194_s26, 32, %s1191_s4, %s1158_s30  }
 0x1e7 PF: > { %p1589_p10 = scmp.ge.s32.totalorder %s1876_s15, 2  ;;  %s1205_s10 = sand.u32 1, %s1864_s12  }
 0x1e8   : > { %p2245_p12 = scmp.ne.s32.totalorder %s2235_s25, 0  ;;  %s1206_s27 = scalar_lea.sflag [#allocation4], %s1205_s10 }
 0x1ea   : > { %p1581_p2 = pnand %p1589_p10, %p2245_p12 }
 0x1ec   : > { %1855 = dma.done.wait (!%p1581_p2), %s1206_s27, 1024  }
 0x1ed   : > { %1857 = vsyncadd (!%p1581_p2), %s1206_s27, 4294966272  ;;  %s1215_s23 = scalar_lea.sflag [#allocation9], %s1205_s10 }
 0x1ee   : > { %1859 = dma.done.wait (!%p1581_p2), %s1215_s23, 32  }
 0x1ef   : > { %1861 = vsyncadd (!%p1581_p2), %s1215_s23, 4294967264  ;;  %p21_p6 = scmp.ge.s32.totalorder %s1933_s18, 6   ;;  %s2246_s12 = smov %s1868_s13 }
 0x1f0   : > { %s2247_s13 = smov %s1872_s14  ;;  %s2248_s14 = smov %s1945_s21 }
 0x1f1   : > { %s2249_s15 = smov %s1933_s18  ;;  %23 = sbr.rel (!%p21_p6) target bundleno = 8 (0x8), region = 94 }
 0x1f8   :  { %1220 = vsyncpa [#allocation3], 1 }
 0x1f9   :  { %1222 = vsyncpa [#allocation3 + $0x1], 1 }
 0x1fa   :  { %1223 = vsyncpa [#allocation6], 1 }
 0x1fb   :  { %1224 = vsyncpa [#allocation4], 1 }
 0x1fc   :  { %1226 = vsyncpa [#allocation4 + $0x1], 1 }
 0x1fd   :  { %1227 = vsyncpa [#allocation9], 1 }
 0x1fe   :  { %1229 = vsyncpa [#allocation9 + $0x1], 1 }

</bundles_post_ra>
